<compile_context>
chip_gen: v7x
topology: tpu7x:2x2x1
jax: 0.10.0
libtpu: 0.0.40
codegen_flags: <defaults>
</compile_context>

<pallas_src>
import functools

import jax
import jax.numpy as jnp
from jax.experimental import pallas as pl
from jax.experimental.pallas import tpu as pltpu


def _policy_kernel(action_bound, state_space, action_space,
                   state_ref, params_ref, mu_ref):
    """Fused MLP for one batch tile, batch on the lane axis.

    state_ref  : (S, TB)        lane-dense state tile
    params_ref : (H+8, S+1+A)   resident packed params (hidden-major)
    mu_ref     : (A, TB)        lane-dense output tile
    """
    S, A = state_space, action_space
    params = params_ref[...]
    state = state_ref[...]

    # ---- Hidden layer on the VPU ---------------------------------------------------------
    # pre[h, b] = b1[h] + sum_k W1^T[k, h] * state[b, k]
    # Each (H+8, 1) parameter column lane-broadcasts once per vreg row and is reused across
    # every 128-batch lane tile; the (1, TB) state rows sublane-broadcast (cheap).
    pre = params[:, S:S + 1]                                   # b1 column, (H+8, 1)
    for k in range(S):                                         # static unroll (S small)
        pre = pre + params[:, k:k + 1] * state[k:k + 1, :]     # (H+8,1)*(1,TB) -> (H+8,TB)
    x = jnp.maximum(pre, 0.0)                                  # ReLU, fused into the chain

    # ---- Output layer: multiply by w2 column, sublane-reduce over hidden units -----------
    # The augmented bias row contributes relu(1.0) * b2[a] = b2[a], folding the bias in.
    for a in range(A):                                         # static unroll (A small)
        w2_col = params[:, S + 1 + a:S + 2 + a]                # (H+8, 1)
        z_a = jnp.sum(x * w2_col, axis=0, keepdims=True)       # dense (1, TB) row
        mu_ref[a:a + 1, :] = (action_bound * jnp.tanh(z_a)).astype(mu_ref.dtype)


def vpg_continuous_forward(state, w1, b1, w2, b2, p3, action_bound, *, batch_tile=1024):
    """Pallas forward pass. Returns (mu, sigma) matching the PyTorch module.

    state : (B, S) float32
    w1    : (S, H)   (pre-transposed W1^T)
    b1    : (H,)
    w2    : (H, A)   (pre-transposed W2^T)
    b2    : (A,)
    p3    : (1,)     learnable sigma parameter
    """
    batch, state_space = state.shape
    hidden = w1.shape[1]
    action_space = w2.shape[1]

    # sigma = softplus(p3): scalar, state-independent -> compute outside the kernel
    # with the numerically stable softplus.
    sigma = jax.nn.softplus(p3.astype(jnp.float32))

    # Hidden-major packed params: (H + 8, S + 1 + A)
    #   params[h, k]     = W1^T[k, h]   for k < S
    #   params[h, S]     = b1[h]
    #   params[h, S+1+a] = W2^T[h, a]
    # Augmented rows H..H+7 keep the sublane count a multiple of 8:
    #   row H:        b1-col = 1.0 (relu -> 1.0), w2-col a = b2[a]  => folds b2 into the sum
    #   rows H+1..H+7: all zero (contribute relu(0) * 0 = 0)
    n_cols = state_space + 1 + action_space
    n_rows = hidden + 8
    params = jnp.zeros((n_rows, n_cols), jnp.float32)
    params = params.at[:hidden, :state_space].set(jnp.transpose(w1).astype(jnp.float32))
    params = params.at[:hidden, state_space].set(b1.astype(jnp.float32))
    params = params.at[:hidden, state_space + 1:].set(w2.astype(jnp.float32))
    params = params.at[hidden, state_space].set(1.0)
    params = params.at[hidden, state_space + 1:].set(b2.astype(jnp.float32))

    # Batch on the lane axis: state transposed to (S, B); mu produced as (A, B).
    state_t = jnp.transpose(state).astype(jnp.float32)

    # Tile selection: lane-dense (multiples of 128) when tiling is needed; guarantee
    # >= 2 grid steps for B >= 256 so the "parallel" axis shards across v7x's 2 TCs.
    tb = min(batch_tile, batch)
    if tb < batch:
        tb = max(128, (tb // 128) * 128)
    if batch >= 256:
        half = 128 * pl.cdiv(pl.cdiv(batch, 2), 128)
        tb = min(tb, half)
    grid = (pl.cdiv(batch, tb),)

    kernel = functools.partial(_policy_kernel, float(action_bound),
                               state_space, action_space)

    mu_t = pl.pallas_call(
        kernel,
        out_shape=jax.ShapeDtypeStruct((action_space, batch), jnp.float32),
        grid=grid,
        in_specs=[
            pl.BlockSpec((state_space, tb), lambda i: (0, i)),    # lane-dense state tile
            pl.BlockSpec((n_rows, n_cols), lambda i: (0, 0)),     # resident packed params
        ],
        out_specs=pl.BlockSpec((action_space, tb), lambda i: (0, i)),  # lane-dense mu tile
        compiler_params=pltpu.CompilerParams(
            dimension_semantics=("parallel",)),
    )(state_t, params)

    # Back to the PyTorch (B, A) convention; wrapper-side transpose is layout plumbing.
    return jnp.transpose(mu_t), sigma  # sigma has shape (1,) like softplus(torch.tensor([1.0]))


def init_params(key, state_space, hidden_size, action_space):
    """Deterministic init mimicking torch.nn.Linear's U(-1/sqrt(fan_in), 1/sqrt(fan_in))."""
    k1, k2, k3, k4 = jax.random.split(key, 4)
    lim1 = 1.0 / jnp.sqrt(state_space)
    lim2 = 1.0 / jnp.sqrt(hidden_size)
    # Stored as (in_features, out_features) -- pre-transposed relative to PyTorch.
    w1 = jax.random.uniform(k1, (state_space, hidden_size), jnp.float32, -lim1, lim1)
    b1 = jax.random.uniform(k2, (hidden_size,), jnp.float32, -lim1, lim1)
    w2 = jax.random.uniform(k3, (hidden_size, action_space), jnp.float32, -lim2, lim2)
    b2 = jax.random.uniform(k4, (action_space,), jnp.float32, -lim2, lim2)
    p3 = jnp.array([1.0], dtype=jnp.float32)  # self.linear3 = Parameter(tensor([1.0]))
    return w1, b1, w2, b2, p3


if __name__ == "__main__":
    # Pendulum-v1: state_space=3, action_space=1, action_bound=[2.0]
    state_space = 3
    action_space = 1
    hidden_size = 256
    action_bound = (2.0,)
    batch = 2

    key = jax.random.PRNGKey(0)
    key_params, key_state = jax.random.split(key)
    w1, b1, w2, b2, p3 = init_params(key_params, state_space, hidden_size, action_space)
    state = jax.random.normal(key_state, (batch, state_space), dtype=jnp.float32)

    mu, sigma = vpg_continuous_forward(state, w1, b1, w2, b2, p3, action_bound[0])
    jax.block_until_ready((mu, sigma))

    # Reference check in plain JAX.
    x_ref = jnp.maximum(state @ w1 + b1, 0.0)
    mu_ref = action_bound[0] * jnp.tanh(x_ref @ w2 + b2)
    sigma_ref = jax.nn.softplus(p3)
    assert mu.shape == (batch, action_space) and sigma.shape == (1,)
    assert jnp.allclose(mu, mu_ref, atol=1e-5), "mu mismatch"
    assert jnp.allclose(sigma, sigma_ref, atol=1e-6), "sigma mismatch"

    print("KERNEL_OK")
</pallas_src>

<mosaic_0001>
module attributes {stable_mosaic.version = 11 : i64} {
  func.func @_policy_kernel(%arg0: i32, %arg1: memref<3x2xf32, #tpu.memory_space<vmem>>, %arg2: memref<264x5xf32, #tpu.memory_space<vmem>>, %arg3: memref<1x2xf32, #tpu.memory_space<vmem>>) attributes {dimension_semantics = [#tpu.dimension_semantics<parallel>], iteration_bounds = array<i64: 1>, scalar_prefetch = 0 : i64, scratch_operands = 0 : i64, tpu.core_type = #tpu.core_type<tc>, window_params = [{transform_indices = @transform_0, window_bounds = array<i64: 3, 2>}, {pipeline_mode = #tpu.pipeline_mode<synchronous>, transform_indices = @transform_1, window_bounds = array<i64: 264, 5>}, {transform_indices = @transform_2, window_bounds = array<i64: 1, 2>}]} {
    %c0 = arith.constant 0 : index
    %c0_0 = arith.constant 0 : index
    %0 = vector.load %arg2[%c0, %c0_0] : memref<264x5xf32, #tpu.memory_space<vmem>>, vector<264x5xf32>
    %c0_1 = arith.constant 0 : index
    %c0_2 = arith.constant 0 : index
    %1 = vector.load %arg1[%c0_1, %c0_2] : memref<3x2xf32, #tpu.memory_space<vmem>>, vector<3x2xf32>
    %2 = vector.extract_strided_slice %0 {offsets = [0, 3], sizes = [264, 1], strides = [1, 1]} : vector<264x5xf32> to vector<264x1xf32>
    %3 = vector.extract_strided_slice %0 {offsets = [0, 0], sizes = [264, 1], strides = [1, 1]} : vector<264x5xf32> to vector<264x1xf32>
    %4 = vector.extract_strided_slice %1 {offsets = [0, 0], sizes = [1, 2], strides = [1, 1]} : vector<3x2xf32> to vector<1x2xf32>
    %5 = vector.broadcast %3 : vector<264x1xf32> to vector<264x2xf32>
    %6 = vector.broadcast %4 : vector<1x2xf32> to vector<264x2xf32>
    %7 = arith.mulf %5, %6 : vector<264x2xf32>
    %8 = vector.broadcast %2 : vector<264x1xf32> to vector<264x2xf32>
    %9 = arith.addf %8, %7 : vector<264x2xf32>
    %10 = vector.extract_strided_slice %0 {offsets = [0, 1], sizes = [264, 1], strides = [1, 1]} : vector<264x5xf32> to vector<264x1xf32>
    %11 = vector.extract_strided_slice %1 {offsets = [1, 0], sizes = [1, 2], strides = [1, 1]} : vector<3x2xf32> to vector<1x2xf32>
    %12 = vector.broadcast %10 : vector<264x1xf32> to vector<264x2xf32>
    %13 = vector.broadcast %11 : vector<1x2xf32> to vector<264x2xf32>
    %14 = arith.mulf %12, %13 : vector<264x2xf32>
    %15 = arith.addf %9, %14 : vector<264x2xf32>
    %16 = vector.extract_strided_slice %0 {offsets = [0, 2], sizes = [264, 1], strides = [1, 1]} : vector<264x5xf32> to vector<264x1xf32>
    %17 = vector.extract_strided_slice %1 {offsets = [2, 0], sizes = [1, 2], strides = [1, 1]} : vector<3x2xf32> to vector<1x2xf32>
    %18 = vector.broadcast %16 : vector<264x1xf32> to vector<264x2xf32>
    %19 = vector.broadcast %17 : vector<1x2xf32> to vector<264x2xf32>
    %20 = arith.mulf %18, %19 : vector<264x2xf32>
    %21 = arith.addf %15, %20 : vector<264x2xf32>
    %cst = arith.constant 0.000000e+00 : f32
    %22 = vector.broadcast %cst : f32 to vector<264x2xf32>
    %23 = arith.maximumf %21, %22 : vector<264x2xf32>
    %24 = vector.extract_strided_slice %0 {offsets = [0, 4], sizes = [264, 1], strides = [1, 1]} : vector<264x5xf32> to vector<264x1xf32>
    %25 = vector.broadcast %24 : vector<264x1xf32> to vector<264x2xf32>
    %26 = arith.mulf %23, %25 : vector<264x2xf32>
    %cst_3 = arith.constant dense<0.000000e+00> : vector<2xf32>
    %27 = vector.multi_reduction <add>, %26, %cst_3 [0] : vector<264x2xf32> to vector<2xf32>
    %28 = vector.shape_cast %27 : vector<2xf32> to vector<1x2xf32>
    %29 = math.tanh %28 : vector<1x2xf32>
    %cst_4 = arith.constant 2.000000e+00 : f32
    %30 = vector.broadcast %cst_4 : f32 to vector<1x2xf32>
    %31 = arith.mulf %30, %29 : vector<1x2xf32>
    %c0_5 = arith.constant 0 : index
    %c0_6 = arith.constant 0 : index
    %32 = vector.load %arg3[%c0_5, %c0_6] : memref<1x2xf32, #tpu.memory_space<vmem>>, vector<1x2xf32>
    tpu.vector_store %arg3[%c0_5, %c0_6], %31 {strides = array<i32>} : memref<1x2xf32, #tpu.memory_space<vmem>>, vector<1x2xf32>,
    return
  }
  func.func @transform_0(%arg0: i32) -> (i32, i32) {
    %c0_i32 = arith.constant 0 : i32
    %c0_i32_0 = arith.constant 0 : i32
    return %c0_i32, %arg0 : i32, i32
  }
  func.func @transform_1(%arg0: i32) -> (i32, i32) {
    %c0_i32 = arith.constant 0 : i32
    %c0_i32_0 = arith.constant 0 : i32
    %c0_i32_1 = arith.constant 0 : i32
    return %c0_i32, %c0_i32_0 : i32, i32
  }
  func.func @transform_2(%arg0: i32) -> (i32, i32) {
    %c0_i32 = arith.constant 0 : i32
    %c0_i32_0 = arith.constant 0 : i32
    return %c0_i32, %arg0 : i32, i32
  }
}

</mosaic_0001>

<bundles_post_ra>
// kernel: tpu_custom_call.1
= control target key start
LH: loop header
LB: loop body
LE: loop exit
PB: predicated region body
PF: predicated region fallthrough
CT: control target
= control target key end

     0   :  { %v1152_v2 = vmov 0   ;;  %s2040_s0 = inlined_call_operand.vmem [shape: f32[3,2], index: 0, kind: input, shape index: {}]   ;;  %s2041_s1 = inlined_call_operand.vmem [shape: f32[264,5], index: 1, kind: input, shape index: {}]   ;;  %s2042_s2 = inlined_call_operand.hbm [shape: f32[1,2], index: 2, kind: output, shape index: {}]  }
   0x1   :  { %v1176_v0 = vld [vmem:[%s2041_s1 + $0x10] sm:$0xff]  ;;  %v1181_v1 = vld [vmem:[%s2041_s1] sm:$0xff]  ;;  %1112 = vset.pattern.permute.xlu1 %v1152_v2  ;;  %1111 = vset.pattern.permute.xlu0 %v1152_v2  ;;  %v1188_v3 = vld [vmem:[%s2041_s1 + $0x18] sm:$0xff] }
   0x2   :  { %58 = vperm.xlu1 %1112, %v1176_v0   ;;  %48 = vperm.xlu0 %1111, %v1181_v1   ;;  %v1193_v4 = vld [vmem:[%s2041_s1 + $0x8] sm:$0xff]  ;;  %v1205_v6 = vld [vmem:[%s2041_s1 + $0x20] sm:$0xff]  ;;  %v1212_v7 = vld [vmem:[%s2041_s1 + $0x38] sm:$0xff] }
   0x3   :  { %v1200_v5 = vld [vmem:[%s2041_s1 + $0x28] sm:$0xff]  ;;  %v1217_v8 = vld [vmem:[%s2041_s1 + $0x30] sm:$0xff] }
   0x6   :  { %63 = vperm.xlu1 %1112, %v1188_v3   ;;  %53 = vperm.xlu0 %1111, %v1193_v4  }
   0xa   :  { %73 = vperm.xlu1 %1112, %v1200_v5   ;;  %68 = vperm.xlu0 %1111, %v1205_v6  }
   0xb   :  { %7 = vsyncpa [#allocation3], 0  ;;  %v1224_v9 = vld [vmem:[%s2041_s1 + $0x48] sm:$0xff]  ;;  %v1229_v10 = vld [vmem:[%s2041_s1 + $0x40] sm:$0xff]  ;;  %v1153_v34 = vmov 3   ;;  %v1154_v39 = vmov 1  }
   0xc   :  { %v1236_v11 = vld [vmem:[%s2041_s1 + $0x58] sm:$0xff]  ;;  %v1241_v12 = vld [vmem:[%s2041_s1 + $0x50] sm:$0xff]  ;;  %v1248_v13 = vld [vmem:[%s2041_s1 + $0x68] sm:$0xff]  ;;  %vm1015_vm0 = vcmask 15360   ;;  %vm1089_vm1 = vcmask 8192  }
   0xd   :  { %v1253_v14 = vld [vmem:[%s2041_s1 + $0x60] sm:$0xff]  ;;  %v1260_v15 = vld [vmem:[%s2041_s1 + $0x78] sm:$0xff]  ;;  %v1265_v16 = vld [vmem:[%s2041_s1 + $0x70] sm:$0xff] }
   0xe   :  { %83 = vperm.xlu1 %1112, %v1212_v7   ;;  %78 = vperm.xlu0 %1111, %v1217_v8   ;;  %v1272_v17 = vld [vmem:[%s2041_s1 + $0x88] sm:$0xff]  ;;  %v1277_v18 = vld [vmem:[%s2041_s1 + $0x80] sm:$0xff]  ;;  %v1284_v19 = vld [vmem:[%s2041_s1 + $0x98] sm:$0xff] }
   0xf   :  { %v1289_v20 = vld [vmem:[%s2041_s1 + $0x90] sm:$0xff]  ;;  %v1296_v21 = vld [vmem:[%s2041_s1 + $0xa8] sm:$0xff]  ;;  %v1301_v22 = vld [vmem:[%s2041_s1 + $0xa0] sm:$0xff] }
  0x10   :  { %v1308_v23 = vld [vmem:[%s2041_s1 + $0xb8] sm:$0xff]  ;;  %v1313_v24 = vld [vmem:[%s2041_s1 + $0xb0] sm:$0xff]  ;;  %v1320_v25 = vld [vmem:[%s2041_s1 + $0xc8] sm:$0xff] }
  0x11   :  { %v1325_v26 = vld [vmem:[%s2041_s1 + $0xc0] sm:$0xff]  ;;  %v1332_v27 = vld [vmem:[%s2041_s1 + $0xd8] sm:$0xff]  ;;  %v1337_v28 = vld [vmem:[%s2041_s1 + $0xd0] sm:$0xff] }
  0x12   :  { %93 = vperm.xlu1 %1112, %v1224_v9   ;;  %88 = vperm.xlu0 %1111, %v1229_v10   ;;  %v1344_v29 = vld [vmem:[%s2041_s1 + $0xe8] sm:$0xff]  ;;  %v1349_v30 = vld [vmem:[%s2041_s1 + $0xe0] sm:$0xff]  ;;  %v1356_v31 = vld [vmem:[%s2041_s1 + $0xf8] sm:$0xff] }
  0x13   :  { %v1361_v32 = vld [vmem:[%s2041_s1 + $0xf0] sm:$0xff]  ;;  %v1368_v33 = vld [vmem:[%s2041_s1 + $0x100] sm:$0xff] }
  0x16   :  { %103 = vperm.xlu1 %1112, %v1236_v11   ;;  %98 = vperm.xlu0 %1111, %v1241_v12  }
  0x1a   :  { %113 = vperm.xlu1 %1112, %v1248_v13   ;;  %108 = vperm.xlu0 %1111, %v1253_v14  }
  0x1e   :  { %123 = vperm.xlu1 %1112, %v1260_v15   ;;  %118 = vperm.xlu0 %1111, %v1265_v16  }
  0x22   :  { %133 = vperm.xlu1 %1112, %v1272_v17   ;;  %128 = vperm.xlu0 %1111, %v1277_v18  }
  0x26   :  { %143 = vperm.xlu1 %1112, %v1284_v19   ;;  %138 = vperm.xlu0 %1111, %v1289_v20  }
  0x2a   :  { %153 = vperm.xlu1 %1112, %v1296_v21   ;;  %148 = vperm.xlu0 %1111, %v1301_v22  }
  0x2e   :  { %163 = vperm.xlu1 %1112, %v1308_v23   ;;  %158 = vperm.xlu0 %1111, %v1313_v24  }
  0x32   :  { %173 = vperm.xlu1 %1112, %v1320_v25   ;;  %168 = vperm.xlu0 %1111, %v1325_v26  }
  0x36   :  { %183 = vperm.xlu1 %1112, %v1332_v27   ;;  %178 = vperm.xlu0 %1111, %v1337_v28  }
  0x3a   :  { %193 = vperm.xlu1 %1112, %v1344_v29   ;;  %188 = vperm.xlu0 %1111, %v1349_v30  }
  0x3e   :  { %203 = vperm.xlu1 %1112, %v1356_v31   ;;  %198 = vperm.xlu0 %1111, %v1361_v32  }
  0x42   :  { %1113 = vset.pattern.permute.xlu1 %v1153_v34  ;;  %208 = vperm.xlu0 %1111, %v1368_v33  }
  0x43   :  { %249 = vperm.xlu1 %1113, %v1181_v1  }
  0x46   :  { %1114 = vset.pattern.permute.xlu0 %v1153_v34 }
  0x47   :  { %257 = vperm.xlu1 %1113, %v1176_v0   ;;  %253 = vperm.xlu0 %1114, %v1193_v4  }
  0x4b   :  { %261 = vperm.xlu1 %1113, %v1188_v3   ;;  %265 = vperm.xlu0 %1114, %v1205_v6  }
  0x4f   :  { %269 = vperm.xlu1 %1113, %v1200_v5   ;;  %273 = vperm.xlu0 %1114, %v1217_v8  }
  0x53   :  { %277 = vperm.xlu1 %1113, %v1212_v7   ;;  %281 = vperm.xlu0 %1114, %v1229_v10  }
  0x57   :  { %285 = vperm.xlu1 %1113, %v1224_v9   ;;  %289 = vperm.xlu0 %1114, %v1241_v12  }
  0x5b   :  { %293 = vperm.xlu1 %1113, %v1236_v11   ;;  %297 = vperm.xlu0 %1114, %v1253_v14  }
  0x5f   :  { %301 = vperm.xlu1 %1113, %v1248_v13   ;;  %305 = vperm.xlu0 %1114, %v1265_v16  }
  0x63   :  { %309 = vperm.xlu1 %1113, %v1260_v15   ;;  %313 = vperm.xlu0 %1114, %v1277_v18  }
  0x67   :  { %317 = vperm.xlu1 %1113, %v1272_v17   ;;  %321 = vperm.xlu0 %1114, %v1289_v20  }
  0x6b   :  { %325 = vperm.xlu1 %1113, %v1284_v19   ;;  %329 = vperm.xlu0 %1114, %v1301_v22  }
  0x6f   :  { %333 = vperm.xlu1 %1113, %v1296_v21   ;;  %337 = vperm.xlu0 %1114, %v1313_v24  }
  0x73   :  { %341 = vperm.xlu1 %1113, %v1308_v23   ;;  %345 = vperm.xlu0 %1114, %v1325_v26  }
  0x77   :  { %349 = vperm.xlu1 %1113, %v1320_v25   ;;  %353 = vperm.xlu0 %1114, %v1337_v28  }
  0x7b   :  { %357 = vperm.xlu1 %1113, %v1332_v27   ;;  %361 = vperm.xlu0 %1114, %v1349_v30  }
  0x7f   :  { %365 = vperm.xlu1 %1113, %v1344_v29   ;;  %369 = vperm.xlu0 %1114, %v1361_v32  }
  0x81   :  { %v1402_v35 = vpop.permute.xlu1 %58  ;;  %v1404_v36 = vpop.permute.xlu0 %48 }
  0x83   :  { %373 = vperm.xlu1 %1113, %v1356_v31   ;;  %377 = vperm.xlu0 %1114, %v1368_v33  }
  0x85   :  { %v1408_v37 = vpop.permute.xlu1 %63  ;;  %v1410_v38 = vpop.permute.xlu0 %53 }
  0x86   :  { %2047 = vst [vmem:[#allocation5_spill] sm:$0xff] %v1408_v37 }
  0x87   :  { %1115 = vset.pattern.permute.xlu1 %v1154_v39  ;;  %1116 = vset.pattern.permute.xlu0 %v1154_v39 }
  0x88   :  { %414 = vperm.xlu1 %1115, %v1181_v1   ;;  %418 = vperm.xlu0 %1116, %v1193_v4  }
  0x89   :  { %v1414_v40 = vpop.permute.xlu1 %73  ;;  %v1416_v41 = vpop.permute.xlu0 %68 }
  0x8a   :  { %2048 = vst [vmem:[#allocation6_spill] sm:$0xff] %v1414_v40  ;;  %2049 = vst [vmem:[#allocation7_spill] sm:$0xff] %v1416_v41 }
  0x8c   :  { %422 = vperm.xlu1 %1115, %v1176_v0   ;;  %430 = vperm.xlu0 %1116, %v1205_v6  }
  0x8d   :  { %v1420_v42 = vpop.permute.xlu1 %83  ;;  %v1422_v43 = vpop.permute.xlu0 %78 }
  0x8e   :  { %2050 = vst [vmem:[#allocation8_spill] sm:$0xff] %v1422_v43 }
  0x90   :  { %426 = vperm.xlu1 %1115, %v1188_v3   ;;  %438 = vperm.xlu0 %1116, %v1217_v8  }
  0x91   :  { %v1426_v44 = vpop.permute.xlu1 %93  ;;  %v1428_v45 = vpop.permute.xlu0 %88 }
  0x92   :  { %2051 = vst [vmem:[#allocation9_spill] sm:$0xff] %v1428_v45 }
  0x94   :  { %434 = vperm.xlu1 %1115, %v1200_v5   ;;  %446 = vperm.xlu0 %1116, %v1229_v10  }
  0x95   :  { %v1432_v46 = vpop.permute.xlu1 %103  ;;  %v1434_v47 = vpop.permute.xlu0 %98 }
  0x96   :  { %2052 = vst [vmem:[#allocation10_spill] sm:$0xff] %v1434_v47 }
  0x98   :  { %442 = vperm.xlu1 %1115, %v1212_v7   ;;  %454 = vperm.xlu0 %1116, %v1241_v12  }
  0x99   :  { %v1438_v48 = vpop.permute.xlu1 %113  ;;  %v1440_v49 = vpop.permute.xlu0 %108 }
  0x9a   :  { %2053 = vst [vmem:[#allocation11_spill] sm:$0xff] %v1440_v49 }
  0x9c   :  { %450 = vperm.xlu1 %1115, %v1224_v9   ;;  %462 = vperm.xlu0 %1116, %v1253_v14  }
  0x9d   :  { %v1444_v50 = vpop.permute.xlu1 %123  ;;  %v1446_v51 = vpop.permute.xlu0 %118 }
  0x9e   :  { %2054 = vst [vmem:[#allocation12_spill] sm:$0xff] %v1446_v51 }
  0xa0   :  { %458 = vperm.xlu1 %1115, %v1236_v11   ;;  %470 = vperm.xlu0 %1116, %v1265_v16  }
  0xa1   :  { %v1450_v52 = vpop.permute.xlu1 %133  ;;  %v1452_v53 = vpop.permute.xlu0 %128 }
  0xa2   :  { %2055 = vst [vmem:[#allocation13_spill] sm:$0xff] %v1452_v53  ;;  %v2045_v53 = vmov 2  }
  0xa4   :  { %466 = vperm.xlu1 %1115, %v1248_v13   ;;  %478 = vperm.xlu0 %1116, %v1277_v18  }
  0xa5   :  { %v1456_v54 = vpop.permute.xlu1 %143  ;;  %v1458_v55 = vpop.permute.xlu0 %138 }
  0xa6   :  { %2056 = vst [vmem:[#allocation14_spill] sm:$0xff] %v1458_v55 }
  0xa8   :  { %474 = vperm.xlu1 %1115, %v1260_v15   ;;  %486 = vperm.xlu0 %1116, %v1289_v20  }
  0xa9   :  { %v1462_v56 = vpop.permute.xlu1 %153  ;;  %v1464_v57 = vpop.permute.xlu0 %148 }
  0xaa   :  { %2057 = vst [vmem:[#allocation15_spill] sm:$0xff] %v1464_v57 }
  0xac   :  { %482 = vperm.xlu1 %1115, %v1272_v17   ;;  %494 = vperm.xlu0 %1116, %v1301_v22  }
  0xad   :  { %v1468_v58 = vpop.permute.xlu1 %163  ;;  %v1470_v59 = vpop.permute.xlu0 %158 }
  0xae   :  { %2058 = vst [vmem:[#allocation16_spill] sm:$0xff] %v1470_v59 }
  0xb0   :  { %490 = vperm.xlu1 %1115, %v1284_v19   ;;  %502 = vperm.xlu0 %1116, %v1313_v24  }
  0xb1   :  { %v1474_v60 = vpop.permute.xlu1 %173  ;;  %v1476_v61 = vpop.permute.xlu0 %168 }
  0xb2   :  { %2059 = vst [vmem:[#allocation17_spill] sm:$0xff] %v1474_v60  ;;  %2060 = vst [vmem:[#allocation18_spill] sm:$0xff] %v1476_v61 }
  0xb4   :  { %498 = vperm.xlu1 %1115, %v1296_v21   ;;  %510 = vperm.xlu0 %1116, %v1325_v26  }
  0xb5   :  { %v1480_v62 = vpop.permute.xlu1 %183  ;;  %v1482_v63 = vpop.permute.xlu0 %178 }
  0xb6   :  { %2061 = vst [vmem:[#allocation19_spill] sm:$0xff] %v1480_v62  ;;  %2062 = vst [vmem:[#allocation20_spill] sm:$0xff] %v1482_v63 }
  0xb8   :  { %506 = vperm.xlu1 %1115, %v1308_v23   ;;  %518 = vperm.xlu0 %1116, %v1337_v28  }
  0xb9   :  { %v1486_v2 = vpop.permute.xlu1 %193  ;;  %v1488_v34 = vpop.permute.xlu0 %188 }
  0xba   :  { %2063 = vst [vmem:[#allocation21_spill] sm:$0xff] %v1486_v2 }
  0xbc   :  { %514 = vperm.xlu1 %1115, %v1320_v25   ;;  %526 = vperm.xlu0 %1116, %v1349_v30  }
  0xbd   :  { %v1492_v39 = vpop.permute.xlu1 %203  ;;  %v1494_v61 = vpop.permute.xlu0 %198 }
  0xbe   :  { %2064 = vst [vmem:[#allocation22_spill] sm:$0xff] %v1492_v39  ;;  %v2043_v39 = vmov 4  }
  0xc0   :  { %522 = vperm.xlu1 %1115, %v1332_v27   ;;  %534 = vperm.xlu0 %1116, %v1361_v32  }
  0xc1   :  { %v1498_v62 = vpop.permute.xlu0 %208 }
  0xc2   :  { %v1500_v63 = vpop.permute.xlu1 %249 }
  0xc3   :  { %2065 = vst [vmem:[#allocation23_spill] sm:$0xff] %v1500_v63  ;;  %v2083_v63 = vmov 2  }
  0xc4   :  { %530 = vperm.xlu1 %1115, %v1344_v29   ;;  %542 = vperm.xlu0 %1116, %v1368_v33  }
  0xc6   :  { %v1504_v2 = vpop.permute.xlu1 %257  ;;  %v1506_v59 = vpop.permute.xlu0 %253 }
  0xc7   :  { %2066 = vst [vmem:[#allocation24_spill] sm:$0xff] %v1504_v2 }
  0xc8   :  { %538 = vperm.xlu1 %1115, %v1356_v31   ;;  %1119 = vset.pattern.permute.xlu0 %v2043_v39 }
  0xc9   :  { %855 = vperm.xlu0 %1119, %v1193_v4  }
  0xca   :  { %v1511_v57 = vpop.permute.xlu1 %261  ;;  %v1513_v55 = vpop.permute.xlu0 %265 }
  0xcb   :  { %2067 = vst [vmem:[#allocation25_spill] sm:$0xff] %v1511_v57  ;;  %2068 = vst [vmem:[#allocation26_spill] sm:$0xff] %v1513_v55 }
  0xcc   :  { %1117 = vset.pattern.permute.xlu1 %v2045_v53 }
  0xcd   :  { %616 = vperm.xlu1 %1117, %v1181_v1   ;;  %867 = vperm.xlu0 %1119, %v1205_v6  }
  0xce   :  { %v1518_v51 = vpop.permute.xlu1 %269  ;;  %v1520_v49 = vpop.permute.xlu0 %273 }
  0xcf   :  { %2069 = vst [vmem:[#allocation27_spill] sm:$0xff] %v1518_v51  ;;  %2070 = vst [vmem:[#allocation28_spill] sm:$0xff] %v1520_v49 }
  0xd1   :  { %624 = vperm.xlu1 %1117, %v1176_v0   ;;  %875 = vperm.xlu0 %1119, %v1217_v8  }
  0xd2   :  { %v1524_v39 = vpop.permute.xlu1 %277  ;;  %v1526_v47 = vpop.permute.xlu0 %281 }
  0xd3   :  { %2071 = vst [vmem:[#allocation29_spill] sm:$0xff] %v1526_v47 }
  0xd5   :  { %628 = vperm.xlu1 %1117, %v1188_v3   ;;  %883 = vperm.xlu0 %1119, %v1229_v10  }
  0xd6   :  { %v1530_v53 = vpop.permute.xlu1 %285  ;;  %v1532_v45 = vpop.permute.xlu0 %289 }
  0xd7   :  { %2072 = vst [vmem:[#allocation30_spill] sm:$0xff] %v1532_v45 }
  0xd9   :  { %636 = vperm.xlu1 %1117, %v1200_v5   ;;  %891 = vperm.xlu0 %1119, %v1241_v12  }
  0xda   :  { %v1536_v51 = vpop.permute.xlu1 %293  ;;  %v1538_v49 = vpop.permute.xlu0 %297 }
  0xdb   :  { %2073 = vst [vmem:[#allocation31_spill] sm:$0xff] %v1538_v49 }
  0xdd   :  { %644 = vperm.xlu1 %1117, %v1212_v7   ;;  %899 = vperm.xlu0 %1119, %v1253_v14  }
  0xde   :  { %v1542_v47 = vpop.permute.xlu1 %301  ;;  %v1544_v57 = vpop.permute.xlu0 %305 }
  0xdf   :  { %2074 = vst [vmem:[#allocation32_spill] sm:$0xff] %v1544_v57 }
  0xe1   :  { %652 = vperm.xlu1 %1117, %v1224_v9   ;;  %907 = vperm.xlu0 %1119, %v1265_v16  }
  0xe2   :  { %v1548_v45 = vpop.permute.xlu1 %309  ;;  %v1550_v43 = vpop.permute.xlu0 %313 }
  0xe3   :  { %2075 = vst [vmem:[#allocation33_spill] sm:$0xff] %v1550_v43 }
  0xe5   :  { %660 = vperm.xlu1 %1117, %v1236_v11   ;;  %915 = vperm.xlu0 %1119, %v1277_v18  }
  0xe6   :  { %v1554_v49 = vpop.permute.xlu1 %317  ;;  %v1556_v40 = vpop.permute.xlu0 %321 }
  0xe7   :  { %2076 = vst [vmem:[#allocation34_spill] sm:$0xff] %v1556_v40 }
  0xe9   :  { %668 = vperm.xlu1 %1117, %v1248_v13   ;;  %923 = vperm.xlu0 %1119, %v1289_v20  }
  0xea   :  { %v1560_v57 = vpop.permute.xlu1 %325  ;;  %v1562_v37 = vpop.permute.xlu0 %329 }
  0xeb   :  { %2077 = vst [vmem:[#allocation35_spill] sm:$0xff] %v1562_v37 }
  0xed   :  { %676 = vperm.xlu1 %1117, %v1260_v15   ;;  %931 = vperm.xlu0 %1119, %v1301_v22  }
  0xee   :  { %v1566_v43 = vpop.permute.xlu1 %333  ;;  %v1568_v55 = vpop.permute.xlu0 %337 }
  0xef   :  { %2078 = vst [vmem:[#allocation36_spill] sm:$0xff] %v1568_v55 }
  0xf1   :  { %684 = vperm.xlu1 %1117, %v1272_v17   ;;  %939 = vperm.xlu0 %1119, %v1313_v24  }
  0xf2   :  { %v1572_v40 = vpop.permute.xlu1 %341  ;;  %v1574_v2 = vpop.permute.xlu0 %345 }
  0xf3   :  { %2079 = vst [vmem:[#allocation37_spill] sm:$0xff] %v1572_v40  ;;  %2080 = vst [vmem:[#allocation38_spill] sm:$0xff] %v1574_v2 }
  0xf5   :  { %692 = vperm.xlu1 %1117, %v1284_v19   ;;  %951 = vperm.xlu0 %1119, %v1320_v25  }
  0xf6   :  { %v1578_v37 = vpop.permute.xlu1 %349  ;;  %v1580_v41 = vpop.permute.xlu0 %353 }
  0xf7   :  { %2081 = vst [vmem:[#allocation39_spill] sm:$0xff] %v1578_v37  ;;  %2082 = vst [vmem:[#allocation40_spill] sm:$0xff] %v1580_v41 }
  0xf9   :  { %700 = vperm.xlu1 %1117, %v1296_v21   ;;  %1121 = vset.pattern.permute.xlu0 %v2083_v63 }
  0xfa   :  { %v1584_v55 = vpop.permute.xlu1 %357  ;;  %620 = vperm.xlu0 %1121, %v1193_v4   ;;  %v1587_v60 = vpop.permute.xlu0 %361 }
  0xfb   :  { %2084 = vst [vmem:[#allocation41_spill] sm:$0xff] %v1584_v55  ;;  %v2087_v55 = vmov 4  }
  0xfd   :  { %708 = vperm.xlu1 %1117, %v1308_v23  }
  0xfe   :  { %v1590_v2 = vpop.permute.xlu1 %365  ;;  %632 = vperm.xlu0 %1121, %v1205_v6   ;;  %v1593_v40 = vpop.permute.xlu0 %369 }
  0xff   :  { %2085 = vst [vmem:[#allocation42_spill] sm:$0xff] %v1590_v2 }
 0x101   :  { %716 = vperm.xlu1 %1117, %v1320_v25  }
 0x102   :  { %v1596_v41 = vpop.permute.xlu1 %373  ;;  %640 = vperm.xlu0 %1121, %v1217_v8   ;;  %v1599_v37 = vpop.permute.xlu0 %377 }
 0x103   :  { %2086 = vst [vmem:[#allocation43_spill] sm:$0xff] %v1596_v41 }
 0x105   :  { %1118 = vset.pattern.permute.xlu1 %v2087_v55 }
 0x106   :  { %851 = vperm.xlu1 %1118, %v1181_v1   ;;  %648 = vperm.xlu0 %1121, %v1229_v10  }
 0x107   :  { %v1604_v4 = vpop.permute.xlu1 %414  ;;  %v1606_v2 = vpop.permute.xlu0 %418 }
 0x10a   :  { %859 = vperm.xlu1 %1118, %v1176_v0   ;;  %656 = vperm.xlu0 %1121, %v1241_v12  }
 0x10b   :  { %v1610_v6 = vpop.permute.xlu1 %422  ;;  %v1612_v25 = vpop.permute.xlu0 %430 }
 0x10e   :  { %863 = vperm.xlu1 %1118, %v1188_v3   ;;  %664 = vperm.xlu0 %1121, %v1253_v14  }
 0x10f   :  { %v1616_v8 = vpop.permute.xlu1 %426  ;;  %v1618_v1 = vpop.permute.xlu0 %438 }
 0x112   :  { %871 = vperm.xlu1 %1118, %v1200_v5   ;;  %672 = vperm.xlu0 %1121, %v1265_v16  }
 0x113   :  { %v1622_v10 = vpop.permute.xlu1 %434  ;;  %v1624_v0 = vpop.permute.xlu0 %446 }
 0x114   :  { %2088 = vst [vmem:[#allocation44_spill] sm:$0xff] %v1622_v10  ;;  %2089 = vst [vmem:[#allocation45_spill] sm:$0xff] %v1624_v0 }
 0x116   :  { %879 = vperm.xlu1 %1118, %v1212_v7   ;;  %680 = vperm.xlu0 %1121, %v1277_v18  }
 0x117   :  { %v1628_v12 = vpop.permute.xlu1 %442  ;;  %v1630_v3 = vpop.permute.xlu0 %454 }
 0x118   :  { %2090 = vst [vmem:[#allocation46_spill] sm:$0xff] %v1630_v3 }
 0x11a   :  { %887 = vperm.xlu1 %1118, %v1224_v9   ;;  %688 = vperm.xlu0 %1121, %v1289_v20  }
 0x11b   :  { %v1634_v14 = vpop.permute.xlu1 %450  ;;  %v1636_v5 = vpop.permute.xlu0 %462 }
 0x11c   :  { %2091 = vst [vmem:[#allocation47_spill] sm:$0xff] %v1636_v5 }
 0x11e   :  { %895 = vperm.xlu1 %1118, %v1236_v11   ;;  %696 = vperm.xlu0 %1121, %v1301_v22  }
 0x11f   :  { %v1640_v16 = vpop.permute.xlu1 %458  ;;  %v1642_v7 = vpop.permute.xlu0 %470 }
 0x120   :  { %2092 = vst [vmem:[#allocation48_spill] sm:$0xff] %v1642_v7 }
 0x122   :  { %903 = vperm.xlu1 %1118, %v1248_v13   ;;  %704 = vperm.xlu0 %1121, %v1313_v24   ;;  %v211_v24 = vlaneseq }
 0x123   :  { %v1646_v18 = vpop.permute.xlu1 %466  ;;  %v1648_v9 = vpop.permute.xlu0 %478 }
 0x124   :  { %2093 = vst [vmem:[#allocation49_spill] sm:$0xff] %v1648_v9  ;;  %v212_v9 = vshrl.u32 %v211_v24, 7 }
 0x126   :  { %911 = vperm.xlu1 %1118, %v1260_v15   ;;  %712 = vperm.xlu0 %1121, %v1325_v26   ;;  %v213_v7 = vsub.s32 0, %v212_v9 }
 0x127   :  { %v1652_v20 = vpop.permute.xlu1 %474  ;;  %v1654_v11 = vpop.permute.xlu0 %486 }
 0x128   :  { %2094 = vst [vmem:[#allocation50_spill] sm:$0xff] %v1654_v11 }
 0x12a   :  { %919 = vperm.xlu1 %1118, %v1272_v17   ;;  %720 = vperm.xlu0 %1121, %v1337_v28  }
 0x12b   :  { %v1658_v22 = vpop.permute.xlu1 %482  ;;  %v1660_v13 = vpop.permute.xlu0 %494 }
 0x12c   :  { %2095 = vst [vmem:[#allocation51_spill] sm:$0xff] %v1660_v13  ;;  %v547_v13 = vsub.s32 1, %v212_v9 }
 0x12e   :  { %927 = vperm.xlu1 %1118, %v1284_v19   ;;  %724 = vperm.xlu0 %1121, %v1332_v27   ;;  %v45_v19 = vld [vmem:[%s2040_s0] sm:$0x7]  ;;  %s1157_s0 = smov [#allocation2]  }
 0x12f   :  { %v1664_v15 = vpop.permute.xlu1 %490  ;;  %v1666_v41 = vpop.permute.xlu0 %502  ;;  %v1684_v24 = vrot.slane %v45_v19, %v213_v7  ;;  %v1688_v5 = vrot.slane %v45_v19, %v547_v13  ;;  %s1097_s20 = sshll.u32 %s1157_s0, 4  ;;  %s1098_s20 = int_to_ptr.vmem [resolvable:$true] %s1097_s20 }
 0x130   :  { %2096 = vst [vmem:[#allocation52_spill] sm:$0xff] %v1666_v41  ;;  %s1128_s21 = scalar_lea.vmem %s1098_s20, 16  ;;  %s1132_s22 = scalar_lea.vmem %s1098_s20, 32 }
 0x131   :  { %v245_v7 = vmul.f32 %v1684_v24, %v1494_v61  ;;  %p1129_p0 = scmp.ne.s32.totalorder %s1098_s20, %s1128_s21  ;;  %p1133_p1 = scmp.lt.s32.totalorder %s1098_s20, %s1098_s20 }
 0x132   :  { %935 = vperm.xlu1 %1118, %v1296_v21   ;;  %736 = vperm.xlu0 %1121, %v1361_v32   ;;  %p1134_p2 = scmp.lt.s32.totalorder %s1132_s22, %s1128_s21 }
 0x133   :  { %v1670_v17 = vpop.permute.xlu1 %498  ;;  %v1672_v11 = vpop.permute.xlu0 %510 }
 0x134   :  { %2097 = vst [vmem:[#allocation53_spill] sm:$0xff] %v1672_v11  ;;  %v243_v11 = vmul.f32 %v1684_v24, %v1488_v34  ;;  %p1135_p3 = por %p1134_p2, %p1133_p1 }
 0x136   :  { %943 = vperm.xlu1 %1118, %v1308_v23   ;;  %1124 = vset.pattern.permute.xlu0 %v2087_v55  ;;  %v408_v0 = vadd.f32 %v1587_v60, %v243_v11  ;;  %v247_v11 = vmul.f32 %v1684_v24, %v1498_v62  ;;  %p1136_p4 = pnand %p1135_p3, %p1129_p0 }
 0x137   :  { %v1679_v41 = vpop.permute.xlu1 %506  ;;  %963 = vperm.xlu0 %1124, %v1349_v30   ;;  %v1682_v21 = vpop.permute.xlu0 %518 }
 0x138   :  { %2098 = vst [vmem:[#allocation54_spill] sm:$0xff] %v1682_v21 }
 0x13a   :  { %947 = vperm.xlu1 %1118, %v1325_v26  }
 0x13b   :  { %v1691_v3 = vpop.permute.xlu1 %514  ;;  %971 = vperm.xlu0 %1124, %v1361_v32   ;;  %v527_v23 = vpop.permute.xlu0 %526  ;;  %v410_v32 = vadd.f32 %v1593_v40, %v245_v7 }
 0x13c   :  { %v577_v10 = vmul.f32 %v1688_v5, %v527_v23 }
 0x13e   :  { %v1698_v21 = vadd.f32 %v577_v10, %v408_v0  ;;  %1120 = vset.pattern.permute.xlu1 %v2083_v63 }
 0x13f   :  { %728 = vperm.xlu1 %1120, %v1349_v30   ;;  %v1702_v34 = vpop.permute.xlu1 %522  ;;  %v535_v26 = vpop.permute.xlu0 %534  ;;  %979 = vperm.xlu0 %1124, %v1368_v33   ;;  %v412_v30 = vadd.f32 %v1599_v37, %v247_v11 }
 0x140   :  { %v579_v60 = vmul.f32 %v1688_v5, %v535_v26 }
 0x142   :  { %v1709_v13 = vadd.f32 %v579_v60, %v410_v32 }
 0x143   :  { %732 = vperm.xlu1 %1120, %v1344_v29   ;;  %v1712_v61 = vpop.permute.xlu1 %530  ;;  %v543_v10 = vpop.permute.xlu0 %542 }
 0x144   :  { %2099 = vst [vmem:[#allocation55_spill] sm:$0xff] %v1709_v13  ;;  %v581_v0 = vmul.f32 %v1688_v5, %v543_v10  ;;  %v224_v13 = vmul.f32 %v1684_v24, %v1426_v44  ;;  %v560_v44 = vmul.f32 %v1688_v5, %v1640_v16 }
 0x146   :  { %v1716_v23 = vadd.f32 %v581_v0, %v412_v30  ;;  %v556_v30 = vmul.f32 %v1688_v5, %v1628_v12 }
 0x147   :  { %1122 = vset.pattern.permute.xlu1 %v2087_v55  ;;  %v1719_v40 = vpop.permute.xlu1 %538 }
 0x148   :  { %2100 = vst [vmem:[#allocation56_spill] sm:$0xff] %v1716_v23  ;;  %2101 = vst [vmem:[#allocation57_spill] sm:$0xff] %v1719_v40  ;;  %955 = vperm.xlu1 %1122, %v1337_v28   ;;  %v1722_v62 = vpop.permute.xlu0 %855  ;;  %v749_v28 = vsub.s32 2, %v212_v9 }
 0x14a   :  { %v1751_v23 = vrot.slane %v45_v19, %v749_v28  ;;  %v226_v28 = vmul.f32 %v1684_v24, %v1432_v46  ;;  %v562_v46 = vmul.f32 %v1688_v5, %v1646_v18 }
 0x14c   :  { %959 = vperm.xlu1 %1122, %v1332_v27   ;;  %v1725_v7 = vpop.permute.xlu1 %616  ;;  %v1727_v26 = vpop.permute.xlu0 %867 }
 0x150   :  { %1123 = vset.pattern.permute.xlu1 %v2083_v63  ;;  %v1730_v37 = vpop.permute.xlu1 %624  ;;  %v1732_v32 = vpop.permute.xlu0 %875  ;;  %v222_v63 = vmul.f32 %v1684_v24, %v1420_v42  ;;  %v558_v42 = vmul.f32 %v1688_v5, %v1634_v14 }
 0x151   :  { %740 = vperm.xlu1 %1123, %v1356_v31  }
 0x152   :  { %v387_v0 = vadd.f32 %v1524_v39, %v222_v63 }
 0x154   :  { %v1735_v60 = vpop.permute.xlu1 %628  ;;  %v1737_v11 = vpop.permute.xlu0 %883  ;;  %v589_v40 = vadd.f32 %v556_v30, %v387_v0  ;;  %v391_v30 = vadd.f32 %v1536_v51, %v226_v28 }
 0x155   :  { %744 = vperm.xlu1 %1123, %v1368_v33  }
 0x158   :  { %v1740_v27 = vpop.permute.xlu1 %636  ;;  %v1742_v10 = vpop.permute.xlu0 %891 }
 0x159   :  { %1125 = vset.pattern.permute.xlu1 %v2087_v55 }
 0x15a   :  { %967 = vperm.xlu1 %1125, %v1344_v29   ;;  %v389_v29 = vadd.f32 %v1530_v53, %v224_v13  ;;  %v228_v13 = vmul.f32 %v1684_v24, %v1438_v48  ;;  %v564_v48 = vmul.f32 %v1688_v5, %v1652_v20 }
 0x15c   :  { %v645_v33 = vpop.permute.xlu1 %644  ;;  %v1753_v9 = vpop.permute.xlu0 %899  ;;  %v591_v63 = vadd.f32 %v558_v42, %v389_v29  ;;  %v393_v16 = vadd.f32 %v1542_v47, %v228_v13  ;;  %v230_v29 = vmul.f32 %v1684_v24, %v1444_v50  ;;  %v566_v50 = vmul.f32 %v1688_v5, %v1658_v22 }
 0x15d   :  { %v758_v12 = vmul.f32 %v1751_v23, %v645_v33 }
 0x15e   :  { %975 = vperm.xlu1 %1125, %v1356_v31   ;;  %v395_v18 = vadd.f32 %v1548_v45, %v230_v29 }
 0x15f   :  { %v1762_v55 = vadd.f32 %v758_v12, %v589_v40  ;;  %v593_v40 = vadd.f32 %v560_v44, %v391_v30 }
 0x160   :  { %v653_v39 = vpop.permute.xlu1 %652  ;;  %v1764_v19 = vpop.permute.xlu0 %907  ;;  %v597_v30 = vadd.f32 %v564_v48, %v395_v18 }
 0x161   :  { %v760_v14 = vmul.f32 %v1751_v23, %v653_v39  ;;  %v595_v39 = vadd.f32 %v562_v46, %v393_v16  ;;  %v234_v46 = vmul.f32 %v1684_v24, %v1456_v54  ;;  %v570_v54 = vmul.f32 %v1688_v5, %v1670_v17 }
 0x162   :  { %v572_v17 = vmul.f32 %v1688_v5, %v1679_v41  ;;  %v2103_v41 = vld [vmem:[#allocation17_spill] sm:$0xff] }
 0x163   :  { %v1772_v0 = vadd.f32 %v760_v14, %v591_v63  ;;  %v232_v14 = vmul.f32 %v1684_v24, %v1450_v52  ;;  %v568_v52 = vmul.f32 %v1688_v5, %v1664_v15  ;;  %v399_v22 = vadd.f32 %v1560_v57, %v234_v46 }
 0x164   :  { %v661_v31 = vpop.permute.xlu1 %660  ;;  %v1774_v53 = vpop.permute.xlu0 %915  ;;  %v216_v15 = vmul.f32 %v1684_v24, %v1410_v38  ;;  %v550_v57 = vmul.f32 %v1688_v5, %v1606_v2  ;;  %v215_v2 = vmul.f32 %v1684_v24, %v1404_v36  ;;  %v751_v36 = vmul.f32 %v1751_v23, %v1725_v7 }
 0x165   :  { %v762_v33 = vmul.f32 %v1751_v23, %v661_v31  ;;  %v397_v20 = vadd.f32 %v1554_v49, %v232_v14  ;;  %v601_v48 = vadd.f32 %v568_v52, %v399_v22  ;;  %v240_v52 = vmul.f32 %v1684_v24, %v2103_v41  ;;  %v2109_v41 = vld [vmem:[#allocation5_spill] sm:$0xff] }
 0x166   :  { %v381_v14 = vadd.f32 %v1506_v59, %v216_v15  ;;  %v2105_v15 = vld [vmem:[#allocation7_spill] sm:$0xff] }
 0x167   :  { %v1782_v42 = vadd.f32 %v762_v33, %v593_v40  ;;  %v599_v33 = vadd.f32 %v566_v50, %v397_v20 }
 0x168   :  { %v669_v12 = vpop.permute.xlu1 %668  ;;  %v1784_v51 = vpop.permute.xlu0 %923  ;;  %v583_v20 = vadd.f32 %v550_v57, %v381_v14  ;;  %v219_v57 = vmul.f32 %v1684_v24, %v2105_v15 }
 0x169   :  { %v764_v28 = vmul.f32 %v1751_v23, %v669_v12 }
 0x16b   :  { %v1792_v63 = vadd.f32 %v764_v28, %v595_v39  ;;  %v236_v39 = vmul.f32 %v1684_v24, %v1462_v56  ;;  %v238_v56 = vmul.f32 %v1684_v24, %v1468_v58  ;;  %v2102_v58 = vld [vmem:[#allocation37_spill] sm:$0xff] }
 0x16c   :  { %v677_v44 = vpop.permute.xlu1 %676  ;;  %v1794_v47 = vpop.permute.xlu0 %931 }
 0x16d   :  { %v766_v31 = vmul.f32 %v1751_v23, %v677_v44  ;;  %v401_v18 = vadd.f32 %v1566_v43, %v236_v39  ;;  %v549_v43 = vmul.f32 %v1688_v5, %v1604_v4  ;;  %v403_v46 = vadd.f32 %v2102_v58, %v238_v56  ;;  %v2107_v56 = vld [vmem:[#allocation39_spill] sm:$0xff] }
 0x16e   :  { %v551_v39 = vmul.f32 %v1688_v5, %v1610_v6  ;;  %v405_v7 = vadd.f32 %v2107_v56, %v240_v52  ;;  %v753_v6 = vmul.f32 %v1751_v23, %v1730_v37  ;;  %v2110_v52 = vld [vmem:[#allocation6_spill] sm:$0xff] }
 0x16f   :  { %v1802_v13 = vadd.f32 %v766_v31, %v597_v30  ;;  %v603_v50 = vadd.f32 %v570_v54, %v401_v18  ;;  %v2106_v18 = vld [vmem:[#allocation24_spill] sm:$0xff]  ;;  %v220_v37 = vmul.f32 %v1684_v24, %v2110_v52 }
 0x170   :  { %v685_v40 = vpop.permute.xlu1 %684  ;;  %v1804_v45 = vpop.permute.xlu0 %939 }
 0x171   :  { %v768_v16 = vmul.f32 %v1751_v23, %v685_v40  ;;  %v217_v40 = vmul.f32 %v1684_v24, %v1402_v35  ;;  %v574_v35 = vmul.f32 %v1688_v5, %v1691_v3  ;;  %v2108_v3 = vld [vmem:[#allocation26_spill] sm:$0xff] }
 0x173   :  { %v1812_v12 = vadd.f32 %v768_v16, %v599_v33  ;;  %v2104_v16 = vld [vmem:[#allocation23_spill] sm:$0xff]  ;;  %v382_v14 = vadd.f32 %v2106_v18, %v217_v40  ;;  %v607_v58 = vadd.f32 %v574_v35, %v405_v7  ;;  %v2112_v35 = vld [vmem:[#allocation25_spill] sm:$0xff]  ;;  %v2113_v18 = vld [vmem:[#allocation28_spill] sm:$0xff] }
 0x174   :  { %v693_v29 = vpop.permute.xlu1 %692  ;;  %v1814_v49 = vpop.permute.xlu0 %951  ;;  %v380_v22 = vadd.f32 %v2104_v16, %v215_v2  ;;  %v2111_v16 = vld [vmem:[#allocation8_spill] sm:$0xff] }
 0x175   :  { %v770_v28 = vmul.f32 %v1751_v23, %v693_v29 }
 0x177   :  { %v1826_v44 = vadd.f32 %v770_v28, %v601_v48  ;;  %v605_v48 = vadd.f32 %v572_v17, %v403_v46 }
 0x178   :  { %v701_v30 = vpop.permute.xlu1 %700 }
 0x179   :  { %v772_v31 = vmul.f32 %v1751_v23, %v701_v30  ;;  %v621_v38 = vpop.permute.xlu0 %620  ;;  %v582_v30 = vadd.f32 %v549_v43, %v380_v22  ;;  %v221_v22 = vmul.f32 %v1684_v24, %v2111_v16 }
 0x17a   :  { %v752_v59 = vmul.f32 %v1751_v23, %v621_v38 }
 0x17b   :  { %v1842_v33 = vadd.f32 %v772_v31, %v603_v50  ;;  %v553_v50 = vmul.f32 %v1688_v5, %v1612_v25  ;;  %v384_v31 = vadd.f32 %v2108_v3, %v219_v57  ;;  %v784_v38 = vadd.f32 %v751_v36, %v582_v30  ;;  %v2115_v3 = vld [vmem:[#allocation44_spill] sm:$0xff] }
 0x17c   :  { %v785_v29 = vadd.f32 %v752_v59, %v583_v20  ;;  %v709_v4 = vpop.permute.xlu1 %708  ;;  %v584_v59 = vadd.f32 %v551_v39, %v382_v14  ;;  %v218_v25 = vmul.f32 %v1684_v24, %v2109_v41  ;;  %v552_v36 = vmul.f32 %v1688_v5, %v1616_v8 }
 0x17d   :  { %v774_v54 = vmul.f32 %v1751_v23, %v709_v4  ;;  %v633_v28 = vpop.permute.xlu0 %632  ;;  %v555_v4 = vmul.f32 %v1688_v5, %v1618_v1  ;;  %v817_v57 = vmax.f32 %v784_v38, 0.0  ;;  %v386_v14 = vadd.f32 %v2113_v18, %v221_v22  ;;  %v2114_v1 = vld [vmem:[#allocation9_spill] sm:$0xff] }
 0x17e   :  { %v818_v2 = vmax.f32 %v785_v29, 0.0  ;;  %v755_v40 = vmul.f32 %v1751_v23, %v633_v28  ;;  %v586_v29 = vadd.f32 %v553_v50, %v384_v31  ;;  %v786_v39 = vadd.f32 %v753_v6, %v584_v59  ;;  %v2117_v38 = vld [vmem:[#allocation45_spill] sm:$0xff] }
 0x17f   :  { %v1862_v17 = vadd.f32 %v774_v54, %v605_v48  ;;  %v383_v54 = vadd.f32 %v2112_v35, %v218_v25  ;;  %v754_v28 = vmul.f32 %v1751_v23, %v1735_v60  ;;  %v223_v50 = vmul.f32 %v1684_v24, %v2114_v1  ;;  %v2116_v60 = vld [vmem:[#allocation27_spill] sm:$0xff]  ;;  %v2118_v25 = vld [vmem:[#allocation29_spill] sm:$0xff] }
 0x180   :  { %v717_v20 = vpop.permute.xlu1 %716  ;;  %v983_v15 = vmul.f32 %v1722_v62, %v818_v2  ;;  %v788_v30 = vadd.f32 %v755_v40, %v586_v29  ;;  %v554_v31 = vmul.f32 %v1688_v5, %v2115_v3  ;;  %v385_v59 = vadd.f32 %v2116_v60, %v220_v37  ;;  %v2121_v3 = vld [vmem:[#allocation30_spill] sm:$0xff] }
 0x181   :  { %v776_v43 = vmul.f32 %v1751_v23, %v717_v20  ;;  %v641_v46 = vpop.permute.xlu0 %640  ;;  %v585_v6 = vadd.f32 %v552_v36, %v383_v54  ;;  %v588_v62 = vadd.f32 %v555_v4, %v386_v14  ;;  %v557_v2 = vmul.f32 %v1688_v5, %v2117_v38 }
 0x182   :  { %v757_v8 = vmul.f32 %v1751_v23, %v641_v46  ;;  %v1017_v41 = vsel %vm1015_vm0, %v983_v15, 0.0  ;;  %v388_v52 = vadd.f32 %v2118_v25, %v223_v50  ;;  %v821_v16 = vmax.f32 %v788_v30, 0.0 }
 0x183   :  { %v1877_v48 = vadd.f32 %v776_v43, %v607_v58  ;;  %v819_v58 = vmax.f32 %v786_v39, 0.0  ;;  %v787_v40 = vadd.f32 %v754_v28, %v585_v6  ;;  %v756_v43 = vmul.f32 %v1751_v23, %v1740_v27  ;;  %v2119_v39 = vld [vmem:[#allocation10_spill] sm:$0xff] }
 0x184   :  { %v790_v22 = vadd.f32 %v757_v8, %v588_v62  ;;  %v587_v4 = vadd.f32 %v554_v31, %v385_v59  ;;  %v225_v28 = vmul.f32 %v1684_v24, %v2119_v39  ;;  %v2120_v27 = vld [vmem:[#allocation46_spill] sm:$0xff]  ;;  %v986_v30 = vmul.f32 %v1727_v26, %v821_v16  ;;  %v2122_v59 = vld [vmem:[#allocation11_spill] sm:$0xff]  ;;  %v2126_v39 = vld [vmem:[#allocation48_spill] sm:$0xff] }
 0x185   :  { %v852_v56 = vpop.permute.xlu1 %851  ;;  %v649_v7 = vpop.permute.xlu0 %648  ;;  %v559_v18 = vmul.f32 %v1688_v5, %v2120_v27  ;;  %v227_v62 = vmul.f32 %v1684_v24, %v2122_v59 }
 0x186   :  { %v982_v20 = vmul.f32 %v852_v56, %v817_v57  ;;  %v759_v35 = vmul.f32 %v1751_v23, %v649_v7  ;;  %v590_v57 = vadd.f32 %v557_v2, %v388_v52  ;;  %v789_v14 = vadd.f32 %v756_v43, %v587_v4  ;;  %v2123_v2 = vld [vmem:[#allocation47_spill] sm:$0xff] }
 0x187   :  { %v820_v56 = vmax.f32 %v787_v40, 0.0  ;;  %v823_v8 = vmax.f32 %v790_v22, 0.0  ;;  %v390_v7 = vadd.f32 %v2121_v3, %v225_v28  ;;  %v2124_v43 = vld [vmem:[#allocation31_spill] sm:$0xff]  ;;  %v1023_v16 = vsel %vm1015_vm0, %v986_v30, 0.0 }
 0x188   :  { %v1016_v46 = vsel %vm1015_vm0, %v982_v20, 0.0  ;;  %v792_v31 = vadd.f32 %v759_v35, %v590_v57  ;;  %v822_v26 = vmax.f32 %v789_v14, 0.0  ;;  %v2125_v35 = vld [vmem:[#allocation12_spill] sm:$0xff]  ;;  %v563_v28 = vmul.f32 %v1688_v5, %v2126_v39 }
 0x189   :  { %v1018_v36 = vadd.f32 %v1017_v41, %v1016_v46  ;;  %v860_v29 = vpop.permute.xlu1 %859  ;;  %v657_v37 = vpop.permute.xlu0 %656  ;;  %v592_v38 = vadd.f32 %v559_v18, %v390_v7  ;;  %v392_v46 = vadd.f32 %v2124_v43, %v227_v62  ;;  %v988_v41 = vmul.f32 %v1732_v32, %v823_v8  ;;  %v2127_v14 = vld [vmem:[#allocation32_spill] sm:$0xff]  ;;  %v2129_v62 = vld [vmem:[#allocation49_spill] sm:$0xff] }
 0x18a   :  { %v984_v54 = vmul.f32 %v860_v29, %v819_v58  ;;  %v761_v20 = vmul.f32 %v1751_v23, %v657_v37  ;;  %v561_v58 = vmul.f32 %v1688_v5, %v2123_v2  ;;  %v824_v18 = vmax.f32 %v1762_v55, 0.0 }
 0x18b   :  { %v565_v55 = vmul.f32 %v1688_v5, %v2129_v62 }
 0x18c   :  { %v1019_v15 = vsel %vm1015_vm0, %v984_v54, 0.0  ;;  %v794_v29 = vadd.f32 %v761_v20, %v592_v38  ;;  %v229_v54 = vmul.f32 %v1684_v24, %v2125_v35  ;;  %v594_v27 = vadd.f32 %v561_v58, %v392_v46  ;;  %v2128_v20 = vld [vmem:[#allocation13_spill] sm:$0xff] }
 0x18d   :  { %v1020_v1 = vadd.f32 %v1019_v15, %v1018_v36  ;;  %v864_v50 = vpop.permute.xlu1 %863  ;;  %v665_v6 = vpop.permute.xlu0 %664  ;;  %v825_v36 = vmax.f32 %v792_v31, 0.0  ;;  %v826_v58 = vmax.f32 %v1772_v0, 0.0  ;;  %v2132_v0 = vld [vmem:[#allocation50_spill] sm:$0xff] }
 0x18e   :  { %v985_v60 = vmul.f32 %v864_v50, %v820_v56  ;;  %v763_v37 = vmul.f32 %v1751_v23, %v665_v6  ;;  %v394_v15 = vadd.f32 %v2127_v14, %v229_v54  ;;  %v827_v3 = vmax.f32 %v794_v29, 0.0  ;;  %v2131_v29 = vld [vmem:[#allocation14_spill] sm:$0xff] }
 0x18f   :  { %v990_v6 = vmul.f32 %v1737_v11, %v825_v36  ;;  %v567_v54 = vmul.f32 %v1688_v5, %v2132_v0 }
 0x190   :  { %v1021_v40 = vsel %vm1015_vm0, %v985_v60, 0.0  ;;  %v796_v7 = vadd.f32 %v763_v37, %v594_v27  ;;  %v231_v60 = vmul.f32 %v1684_v24, %v2128_v20  ;;  %v596_v59 = vadd.f32 %v563_v28, %v394_v15 }
 0x191   :  { %v1022_v25 = vadd.f32 %v1021_v40, %v1020_v1  ;;  %v872_v52 = vpop.permute.xlu1 %871  ;;  %v673_v22 = vpop.permute.xlu0 %672  ;;  %v1027_v1 = vsel %vm1015_vm0, %v988_v41, 0.0  ;;  %v2130_v40 = vld [vmem:[#allocation33_spill] sm:$0xff]  ;;  %v1031_v36 = vsel %vm1015_vm0, %v990_v6, 0.0  ;;  %v233_v37 = vmul.f32 %v1684_v24, %v2131_v29 }
 0x192   :  { %v987_v4 = vmul.f32 %v872_v52, %v822_v26  ;;  %v765_v30 = vmul.f32 %v1751_v23, %v673_v22  ;;  %v396_v26 = vadd.f32 %v2130_v40, %v231_v60  ;;  %v992_v52 = vmul.f32 %v1742_v10, %v827_v3 }
 0x193   :  { %v1024_v57 = vadd.f32 %v1023_v16, %v1022_v25  ;;  %v829_v16 = vmax.f32 %v796_v7, 0.0  ;;  %v828_v28 = vmax.f32 %v1782_v42, 0.0  ;;  %v2135_v42 = vld [vmem:[#allocation51_spill] sm:$0xff]  ;;  %v830_v60 = vmax.f32 %v1792_v63, 0.0  ;;  %v2138_v63 = vld [vmem:[#allocation52_spill] sm:$0xff] }
 0x194   :  { %v1025_v32 = vsel %vm1015_vm0, %v987_v4, 0.0  ;;  %v798_v43 = vadd.f32 %v765_v30, %v596_v59  ;;  %v598_v4 = vadd.f32 %v565_v55, %v396_v26  ;;  %v2136_v59 = vld [vmem:[#allocation35_spill] sm:$0xff] }
 0x195   :  { %v1026_v56 = vadd.f32 %v1025_v32, %v1024_v57  ;;  %v880_v8 = vpop.permute.xlu1 %879  ;;  %v681_v50 = vpop.permute.xlu0 %680  ;;  %v2133_v57 = vld [vmem:[#allocation34_spill] sm:$0xff] }
 0x196   :  { %v989_v31 = vmul.f32 %v880_v8, %v824_v18  ;;  %v767_v11 = vmul.f32 %v1751_v23, %v681_v50  ;;  %v398_v27 = vadd.f32 %v2133_v57, %v233_v37  ;;  %v831_v32 = vmax.f32 %v798_v43, 0.0  ;;  %v2134_v50 = vld [vmem:[#allocation15_spill] sm:$0xff] }
 0x197   :  { %v1028_v38 = vadd.f32 %v1027_v1, %v1026_v56  ;;  %v994_v56 = vmul.f32 %v1753_v9, %v829_v16  ;;  %v1035_v1 = vsel %vm1015_vm0, %v992_v52, 0.0  ;;  %v235_v6 = vmul.f32 %v1684_v24, %v2134_v50 }
 0x198   :  { %v1029_v2 = vsel %vm1015_vm0, %v989_v31, 0.0  ;;  %v800_v10 = vadd.f32 %v767_v11, %v598_v4  ;;  %v600_v7 = vadd.f32 %v567_v54, %v398_v27  ;;  %v569_v31 = vmul.f32 %v1688_v5, %v2135_v42  ;;  %v2141_v42 = vld [vmem:[#allocation53_spill] sm:$0xff] }
 0x199   :  { %v1030_v46 = vadd.f32 %v1029_v2, %v1028_v38  ;;  %v888_v41 = vpop.permute.xlu1 %887  ;;  %v689_v25 = vpop.permute.xlu0 %688  ;;  %v400_v62 = vadd.f32 %v2136_v59, %v235_v6  ;;  %v996_v9 = vmul.f32 %v1764_v19, %v831_v32  ;;  %v1039_v43 = vsel %vm1015_vm0, %v994_v56, 0.0 }
 0x19a   :  { %v991_v22 = vmul.f32 %v888_v41, %v826_v58  ;;  %v769_v30 = vmul.f32 %v1751_v23, %v689_v25  ;;  %v833_v55 = vmax.f32 %v800_v10, 0.0  ;;  %v571_v16 = vmul.f32 %v1688_v5, %v2138_v63 }
 0x19b   :  { %v1032_v35 = vadd.f32 %v1031_v36, %v1030_v46  ;;  %v2137_v46 = vld [vmem:[#allocation16_spill] sm:$0xff]  ;;  %v602_v52 = vadd.f32 %v569_v31, %v400_v62  ;;  %v1043_v0 = vsel %vm1015_vm0, %v996_v9, 0.0  ;;  %v836_v6 = vmax.f32 %v1826_v44, 0.0 }
 0x19c   :  { %v1033_v39 = vsel %vm1015_vm0, %v991_v22, 0.0  ;;  %v802_v58 = vadd.f32 %v769_v30, %v600_v7  ;;  %v237_v11 = vmul.f32 %v1684_v24, %v2137_v46  ;;  %v832_v22 = vmax.f32 %v1802_v13, 0.0  ;;  %v2139_v36 = vld [vmem:[#allocation36_spill] sm:$0xff] }
 0x19d   :  { %v1034_v18 = vadd.f32 %v1033_v39, %v1032_v35  ;;  %v896_v14 = vpop.permute.xlu1 %895  ;;  %v697_v15 = vpop.permute.xlu0 %696  ;;  %v998_v37 = vmul.f32 %v1774_v53, %v833_v55 }
 0x19e   :  { %v993_v8 = vmul.f32 %v896_v14, %v828_v28  ;;  %v771_v40 = vmul.f32 %v1751_v23, %v697_v15  ;;  %v402_v29 = vadd.f32 %v2139_v36, %v237_v11  ;;  %v835_v54 = vmax.f32 %v802_v58, 0.0 }
 0x19f   :  { %v1036_v3 = vadd.f32 %v1035_v1, %v1034_v18  ;;  %v834_v18 = vmax.f32 %v1812_v12, 0.0  ;;  %v1047_v15 = vsel %vm1015_vm0, %v998_v37, 0.0  ;;  %v573_v12 = vmul.f32 %v1688_v5, %v2141_v42 }
 0x1a0   :  { %v1037_v20 = vsel %vm1015_vm0, %v993_v8, 0.0  ;;  %v804_v39 = vadd.f32 %v771_v40, %v602_v52  ;;  %v604_v32 = vadd.f32 %v571_v16, %v402_v29  ;;  %v1000_v53 = vmul.f32 %v1784_v51, %v835_v54 }
 0x1a1   :  { %v1038_v38 = vadd.f32 %v1037_v20, %v1036_v3  ;;  %v904_v2 = vpop.permute.xlu1 %903  ;;  %v705_v25 = vpop.permute.xlu0 %704  ;;  %v2140_v3 = vld [vmem:[#allocation18_spill] sm:$0xff]  ;;  %v838_v40 = vmax.f32 %v1842_v33, 0.0  ;;  %v840_v16 = vmax.f32 %v1862_v17, 0.0  ;;  %v842_v36 = vmax.f32 %v1877_v48, 0.0 }
 0x1a2   :  { %v995_v26 = vmul.f32 %v904_v2, %v830_v60  ;;  %v773_v28 = vmul.f32 %v1751_v23, %v705_v25  ;;  %v837_v56 = vmax.f32 %v804_v39, 0.0  ;;  %v239_v7 = vmul.f32 %v1684_v24, %v2140_v3  ;;  %v2147_v3 = vld [vmem:[#allocation41_spill] sm:$0xff] }
 0x1a3   :  { %v1040_v41 = vadd.f32 %v1039_v43, %v1038_v38  ;;  %v1051_v9 = vsel %vm1015_vm0, %v1000_v53, 0.0  ;;  %v2142_v38 = vld [vmem:[#allocation38_spill] sm:$0xff]  ;;  %v1007_v39 = vmul.f32 %v1814_v49, %v842_v36  ;;  %v2146_v49 = vld [vmem:[#allocation19_spill] sm:$0xff] }
 0x1a4   :  { %v1041_v19 = vsel %vm1015_vm0, %v995_v26, 0.0  ;;  %v806_v30 = vadd.f32 %v773_v28, %v604_v32  ;;  %v1002_v59 = vmul.f32 %v1794_v47, %v837_v56  ;;  %v404_v2 = vadd.f32 %v2142_v38, %v239_v7 }
 0x1a5   :  { %v1042_v4 = vadd.f32 %v1041_v19, %v1040_v41  ;;  %v912_v35 = vpop.permute.xlu1 %911  ;;  %v713_v31 = vpop.permute.xlu0 %712  ;;  %v1065_v53 = vsel %vm1015_vm0, %v1007_v39, 0.0 }
 0x1a6   :  { %v997_v57 = vmul.f32 %v912_v35, %v832_v22  ;;  %v839_v51 = vmax.f32 %v806_v30, 0.0  ;;  %v775_v44 = vmul.f32 %v1751_v23, %v713_v31  ;;  %v606_v46 = vadd.f32 %v573_v12, %v404_v2 }
 0x1a7   :  { %v1044_v27 = vadd.f32 %v1043_v0, %v1042_v4  ;;  %v1055_v47 = vsel %vm1015_vm0, %v1002_v59, 0.0 }
 0x1a8   :  { %v1045_v10 = vsel %vm1015_vm0, %v997_v57, 0.0  ;;  %v1004_v11 = vmul.f32 %v1804_v45, %v839_v51  ;;  %v808_v52 = vadd.f32 %v775_v44, %v606_v46  ;;  %v2143_v57 = vld [vmem:[#allocation20_spill] sm:$0xff]  ;;  %v2148_v46 = vld [vmem:[#allocation21_spill] sm:$0xff] }
 0x1a9   :  { %v1046_v13 = vadd.f32 %v1045_v10, %v1044_v27  ;;  %v920_v14 = vpop.permute.xlu1 %919  ;;  %v721_v35 = vpop.permute.xlu0 %720  ;;  %v241_v17 = vmul.f32 %v1684_v24, %v2143_v57  ;;  %v2144_v27 = vld [vmem:[#allocation54_spill] sm:$0xff] }
 0x1aa   :  { %v999_v8 = vmul.f32 %v920_v14, %v834_v18  ;;  %v1059_v33 = vsel %vm1015_vm0, %v1004_v11, 0.0  ;;  %v841_v45 = vmax.f32 %v808_v52, 0.0  ;;  %v575_v32 = vmul.f32 %v1688_v5, %v2144_v27  ;;  %v2145_v18 = vld [vmem:[#allocation40_spill] sm:$0xff] }
 0x1ab   :  { %v1048_v1 = vadd.f32 %v1047_v15, %v1046_v13  ;;  %v406_v13 = vadd.f32 %v2145_v18, %v241_v17  ;;  %v777_v14 = vmul.f32 %v1751_v23, %v721_v35  ;;  %v244_v11 = vmul.f32 %v1684_v24, %v2148_v46 }
 0x1ac   :  { %v1049_v50 = vsel %vm1015_vm0, %v999_v8, 0.0  ;;  %v242_v8 = vmul.f32 %v1684_v24, %v2146_v49 }
 0x1ad   :  { %v1050_v20 = vadd.f32 %v1049_v50, %v1048_v1  ;;  %v928_v60 = vpop.permute.xlu1 %927  ;;  %v725_v56 = vpop.permute.xlu0 %724  ;;  %v608_v1 = vadd.f32 %v575_v32, %v406_v13  ;;  %v576_v50 = vmul.f32 %v1688_v5, %v1702_v34 }
 0x1ae   :  { %v1001_v62 = vmul.f32 %v928_v60, %v836_v6  ;;  %v407_v7 = vadd.f32 %v2147_v3, %v242_v8  ;;  %v778_v12 = vmul.f32 %v1751_v23, %v725_v56 }
 0x1af   :  { %v1052_v55 = vadd.f32 %v1051_v9, %v1050_v20  ;;  %v810_v42 = vadd.f32 %v777_v14, %v608_v1 }
 0x1b0   :  { %v1053_v58 = vsel %vm1015_vm0, %v1001_v62, 0.0  ;;  %v609_v20 = vadd.f32 %v576_v50, %v407_v7 }
 0x1b1   :  { %v1054_v26 = vadd.f32 %v1053_v58, %v1052_v55  ;;  %v936_v43 = vpop.permute.xlu1 %935  ;;  %v737_v59 = vpop.permute.xlu0 %736  ;;  %v843_v62 = vmax.f32 %v810_v42, 0.0 }
 0x1b2   :  { %v1003_v41 = vmul.f32 %v936_v43, %v838_v40  ;;  %v811_v51 = vadd.f32 %v778_v12, %v609_v20 }
 0x1b3   :  { %v1056_v25 = vadd.f32 %v1055_v47, %v1054_v26 }
 0x1b4   :  { %v1057_v63 = vsel %vm1015_vm0, %v1003_v41, 0.0  ;;  %v844_v34 = vmax.f32 %v811_v51, 0.0 }
 0x1b5   :  { %v1058_v19 = vadd.f32 %v1057_v63, %v1056_v25  ;;  %v944_v22 = vpop.permute.xlu1 %943  ;;  %v2149_v25 = vld [vmem:[#allocation42_spill] sm:$0xff]  ;;  %v781_v63 = vmul.f32 %v1751_v23, %v737_v59 }
 0x1b6   :  { %v1005_v29 = vmul.f32 %v944_v22, %v840_v16  ;;  %v964_v44 = vpop.permute.xlu0 %963  ;;  %v409_v52 = vadd.f32 %v2149_v25, %v244_v11 }
 0x1b7   :  { %v1060_v37 = vadd.f32 %v1059_v33, %v1058_v19 }
 0x1b8   :  { %v1061_v4 = vsel %vm1015_vm0, %v1005_v29, 0.0  ;;  %v2150_v29 = vld [vmem:[#allocation22_spill] sm:$0xff] }
 0x1b9   :  { %v1062_v0 = vadd.f32 %v1061_v4, %v1060_v37  ;;  %v948_v54 = vpop.permute.xlu1 %947  ;;  %v246_v33 = vmul.f32 %v1684_v24, %v2150_v29  ;;  %v2151_v4 = vld [vmem:[#allocation57_spill] sm:$0xff] }
 0x1ba   :  { %v1006_v28 = vmul.f32 %v948_v54, %v841_v45  ;;  %v2152_v45 = vld [vmem:[#allocation43_spill] sm:$0xff]  ;;  %v972_v32 = vpop.permute.xlu0 %971 }
 0x1bb   :  { %v411_v35 = vadd.f32 %v2152_v45, %v246_v33 }
 0x1bc   :  { %v1063_v48 = vsel %vm1015_vm0, %v1006_v28, 0.0 }
 0x1bd   :  { %v1064_v10 = vadd.f32 %v1063_v48, %v1062_v0  ;;  %v2153_v0 = vld [vmem:[#allocation55_spill] sm:$0xff]  ;;  %v2154_v48 = vld [vmem:[#allocation56_spill] sm:$0xff] }
 0x1be   :  { %v729_v15 = vpop.permute.xlu1 %728  ;;  %v814_v54 = vadd.f32 %v781_v63, %v2153_v0  ;;  %v980_v49 = vpop.permute.xlu0 %979 }
 0x1bf   :  { %v1066_v30 = vadd.f32 %v1065_v53, %v1064_v10  ;;  %v779_v6 = vmul.f32 %v1751_v23, %v729_v15 }
 0x1c0   :  { %v847_v18 = vmax.f32 %v814_v54, 0.0 }
 0x1c1   :  { %v812_v60 = vadd.f32 %v779_v6, %v1698_v21  ;;  %v578_v21 = vmul.f32 %v1688_v5, %v1712_v61  ;;  %v580_v61 = vmul.f32 %v1688_v5, %v2151_v4 }
 0x1c2   :  { %v733_v31 = vpop.permute.xlu1 %732  ;;  %v1012_v15 = vmul.f32 %v972_v32, %v847_v18 }
 0x1c3   :  { %v845_v55 = vmax.f32 %v812_v60, 0.0  ;;  %v780_v16 = vmul.f32 %v1751_v23, %v733_v31  ;;  %v611_v37 = vadd.f32 %v578_v21, %v409_v52  ;;  %v613_v27 = vadd.f32 %v580_v61, %v411_v35 }
 0x1c4   :  { %v1075_v50 = vsel %vm1015_vm0, %v1012_v15, 0.0 }
 0x1c5   :  { %v1010_v26 = vmul.f32 %v964_v44, %v845_v55  ;;  %v813_v39 = vadd.f32 %v780_v16, %v611_v37 }
 0x1c7   :  { %v956_v9 = vpop.permute.xlu1 %955  ;;  %v1071_v22 = vsel %vm1015_vm0, %v1010_v26, 0.0  ;;  %v846_v13 = vmax.f32 %v813_v39, 0.0 }
 0x1c8   :  { %v1008_v38 = vmul.f32 %v956_v9, %v843_v62 }
 0x1ca   :  { %v1067_v2 = vsel %vm1015_vm0, %v1008_v38, 0.0 }
 0x1cb   :  { %v1068_v58 = vadd.f32 %v1067_v2, %v1066_v30  ;;  %v960_v40 = vpop.permute.xlu1 %959 }
 0x1cc   :  { %v1009_v43 = vmul.f32 %v960_v40, %v844_v34 }
 0x1ce   :  { %v1069_v41 = vsel %vm1015_vm0, %v1009_v43, 0.0 }
 0x1cf   :  { %v1070_v47 = vadd.f32 %v1069_v41, %v1068_v58 }
 0x1d0   :  { %v741_v19 = vpop.permute.xlu1 %740 }
 0x1d1   :  { %v1072_v36 = vadd.f32 %v1071_v22, %v1070_v47  ;;  %v782_v28 = vmul.f32 %v1751_v23, %v741_v19 }
 0x1d3   :  { %v815_v24 = vadd.f32 %v782_v28, %v613_v27 }
 0x1d4   :  { %v745_v57 = vpop.permute.xlu1 %744 }
 0x1d5   :  { %v783_v17 = vmul.f32 %v1751_v23, %v745_v57  ;;  %v848_v30 = vmax.f32 %v815_v24, 0.0 }
 0x1d7   :  { %v816_v10 = vadd.f32 %v783_v17, %v2154_v48 }
 0x1d9   :  { %v968_v14 = vpop.permute.xlu1 %967  ;;  %v849_v5 = vmax.f32 %v816_v10, 0.0 }
 0x1da   :  { %v1011_v53 = vmul.f32 %v968_v14, %v846_v13 }
 0x1db   :  { %v1014_v23 = vmul.f32 %v980_v49, %v849_v5 }
 0x1dc   :  { %v1073_v56 = vsel %vm1015_vm0, %v1011_v53, 0.0 }
 0x1dd   :  { %v1074_v8 = vadd.f32 %v1073_v56, %v1072_v36  ;;  %v976_v1 = vpop.permute.xlu1 %975  ;;  %v1079_v12 = vsel %vm1015_vm0, %v1014_v23, 0.0 }
 0x1de   :  { %v1013_v6 = vmul.f32 %v976_v1, %v848_v30 }
 0x1df   :  { %v1076_v3 = vadd.f32 %v1075_v50, %v1074_v8 }
 0x1e0   :  { %v1077_v7 = vsel %vm1015_vm0, %v1013_v6, 0.0 }
 0x1e1   :  { %v1078_v42 = vadd.f32 %v1077_v7, %v1076_v3 }
 0x1e3   :  { %v1080_v31 = vadd.f32 %v1079_v12, %v1078_v42 }
 0x1e5   :  { %v1081_v20 = vrot.slane %v1080_v31, 4 }
 0x1e7   :  { %v1082_v60 = vadd.f32 %v1081_v20, %v1080_v31 }
 0x1e9   :  { %v1083_v59 = vrot.slane %v1082_v60, 2 }
 0x1eb   :  { %v1084_v51 = vadd.f32 %v1083_v59, %v1082_v60 }
 0x1ed   :  { %v1085_v62 = vrot.slane %v1084_v51, 1 }
 0x1ef   :  { %v1086_v9 = vadd.f32 %v1085_v62, %v1084_v51 }
 0x1f1   :  { %1126 = vtanh.f32 %v1086_v9 }
 0x1fb   :  { %v1127_v55 = vpop.eup %1126 }
 0x1fc   :  { %v1088_v38 = vmul.f32 2.0, %v1127_v55 }
 0x1fe   :  { %1090 = vst.msk [vmem:[#allocation2] sm:$0x1] %vm1089_vm1, %v1088_v38 }
 0x1ff   :  { %1139 = shalt.err (!%p1136_p4)
}
 0x200   :  { %s1140_s25 = scalar_lea.hbm %s2042_s2, 16 }
 0x201   :  { %p1141_p5 = scmp.ne.s32.totalorder %s2042_s2, %s1140_s25  ;;  %p1144_p6 = scmp.lt.u32.totalorder %s1140_s25, %s2042_s2 }
 0x203   :  { %p1146_p7 = pnand %p1144_p6, %p1141_p5 }
 0x205   :  { %1149 = shalt.err (!%p1146_p7)
}
 0x206   :  { %1100 = dma.vmem_to_hbm [thread:$0]  %s1098_s20, 16, %s2042_s2, [#allocation3]  }
 0x207   :  { %1150 = dma.done.wait [#allocation3], 16  }
 0x208   :  { %1151 = vsyncadd [#allocation3], 4294967280 }
 0x209   :  { %1104 = vsyncpa [#allocation3], 1 }

</bundles_post_ra>
